<compile_context>
chip_gen: v7x
topology: tpu7x:2x2x1
jax: 0.10.0
libtpu: 0.0.40
codegen_flags: <defaults>
</compile_context>

<pallas_src>
import functools

import jax
import jax.numpy as jnp
import numpy as np
from jax.experimental import pallas as pl
from jax.experimental.pallas import tpu as pltpu


def _dann_kernel(fs_ref, ft_ref, ws_ref, wt_ref, w1_ref, b1_ref, w2_ref, b2_ref,
                 w3_ref, b3_ref, loss_ref, acc_ref, *, batch_per_domain: int):
    B = batch_per_domain
    b3 = b3_ref[0, 0]                                   # SMEM scalar

    def mlp_logit(x_bf16):
        # --- shared-weight discriminator: bf16 MXU feeds, f32 accumulate/epilogue ---
        h1 = jnp.dot(x_bf16, w1_ref[...], preferred_element_type=jnp.float32) + b1_ref[...]
        h1 = jnp.maximum(h1, 0.0)                       # (B, H) f32
        h2 = jnp.dot(h1.astype(jnp.bfloat16), w2_ref[...],
                     preferred_element_type=jnp.float32) + b2_ref[...]
        h2 = jnp.maximum(h2, 0.0)                       # (B, H) f32
        # Out-dim-1 projection as multiply + cross-lane (XLU) reduce: no h2 transpose,
        # no N=1 MXU pass, exact f32.
        return jnp.sum(h2 * w3_ref[...], axis=-1, keepdims=True) + b3   # (B, 1)

    logit_s = mlp_logit(fs_ref[...])                    # source half (label 1)
    logit_t = mlp_logit(ft_ref[...])                    # target half (label 0)

    # Stable logits-space BCE:  y=1 -> softplus(-x),  y=0 -> softplus(x).
    # min(., 100) reproduces F.binary_cross_entropy's log clamp at -100.
    def _softplus_clamped(x):
        return jnp.minimum(
            jnp.maximum(x, 0.0) + jnp.log(1.0 + jnp.exp(-jnp.abs(x))), 100.0)

    inv_b = 1.0 / B
    loss_s = jnp.sum(ws_ref[...] * _softplus_clamped(-logit_s)) * inv_b   # mean over d_s
    loss_t = jnp.sum(wt_ref[...] * _softplus_clamped(logit_t)) * inv_b    # mean over d_t
    loss_ref[0, 0] = 0.5 * (loss_s + loss_t)

    # --- binary accuracy side output:  (sigmoid(x) >= 0.5)  <=>  (x >= 0) ---
    acc_s = jnp.sum((logit_s >= 0.0).astype(jnp.float32)) * (100.0 * inv_b)
    acc_t = jnp.sum((logit_t < 0.0).astype(jnp.float32)) * (100.0 * inv_b)
    acc_ref[0, 0] = 0.5 * (acc_s + acc_t)


@jax.jit
def _dann_forward(f_s, f_t, w_s, w_t, w1, b1, w2, b2, w3_row, b3):
    B, Fdim = f_s.shape
    H = w1.shape[1]
    ws_col = w_s.reshape(B, 1).astype(jnp.float32)
    wt_col = w_t.reshape(B, 1).astype(jnp.float32)

    # Advisory cost hint so XLA can overlap this small custom call with neighbours.
    cost = pl.CostEstimate(
        flops=int(2 * 2 * B * (Fdim * H + H * H) + 2 * 2 * B * H),
        transcendentals=int(2 * 2 * B),
        bytes_accessed=int(2 * B * Fdim * 2 + (Fdim * H + H * H) * 2
                           + (3 * H + 1 + 2 * B) * 4),
    )

    kernel = functools.partial(_dann_kernel, batch_per_domain=B)
    loss, acc = pl.pallas_call(
        kernel,
        out_shape=(jax.ShapeDtypeStruct((1, 1), jnp.float32),
                   jax.ShapeDtypeStruct((1, 1), jnp.float32)),
        in_specs=[pl.BlockSpec(memory_space=pltpu.MemorySpace.VMEM)] * 9
                 + [pl.BlockSpec(memory_space=pltpu.MemorySpace.SMEM)],   # b3 scalar
        out_specs=(pl.BlockSpec(memory_space=pltpu.MemorySpace.SMEM),
                   pl.BlockSpec(memory_space=pltpu.MemorySpace.SMEM)),
        cost_estimate=cost,
    )(f_s.astype(jnp.bfloat16), f_t.astype(jnp.bfloat16),   # bf16 ingestion, no f32 copy
      ws_col, wt_col,
      w1.astype(jnp.bfloat16), b1.astype(jnp.float32),
      w2.astype(jnp.bfloat16), b2.astype(jnp.float32),
      w3_row.astype(jnp.float32), b3.astype(jnp.float32))
    return loss[0, 0], acc[0, 0]


def domain_adversarial_loss(f_s, f_t, params, w_s=None, w_t=None):
    """Returns (loss, domain_discriminator_accuracy) as scalars."""
    B = f_s.shape[0]
    if w_s is None:
        w_s = jnp.ones((B, 1), jnp.float32)
    if w_t is None:
        w_t = jnp.ones((B, 1), jnp.float32)
    w1, b1, w2, b2, w3_row, b3 = params
    return _dann_forward(f_s, f_t, w_s, w_t, w1, b1, w2, b2, w3_row, b3)


def init_discriminator_params(key, in_feature, hidden):
    """Synthetic discriminator params.  Hidden weights stored (in, out); last layer stored
    as a (1, hidden) row for the multiply+lane-reduce projection in the kernel."""
    k1, k2, k3 = jax.random.split(key, 3)
    w1 = jax.random.normal(k1, (in_feature, hidden), jnp.float32) * (1.0 / np.sqrt(in_feature))
    b1 = jnp.zeros((1, hidden), jnp.float32)
    w2 = jax.random.normal(k2, (hidden, hidden), jnp.float32) * (1.0 / np.sqrt(hidden))
    b2 = jnp.zeros((1, hidden), jnp.float32)
    w3_row = jax.random.normal(k3, (1, hidden), jnp.float32) * (1.0 / np.sqrt(hidden))
    b3 = jnp.zeros((1, 1), jnp.float32)
    return (w1, b1, w2, b2, w3_row, b3)


def _reference(f_s, f_t, params, w_s=None, w_t=None):
    """Pure-JAX, PyTorch-faithful reference (sigmoid + clamped log), using the same
    bf16 MXU feeds as the kernel so numerics line up."""
    w1, b1, w2, b2, w3_row, b3 = params
    B = f_s.shape[0]
    if w_s is None:
        w_s = jnp.ones((B, 1), jnp.float32)
    if w_t is None:
        w_t = jnp.ones((B, 1), jnp.float32)
    f = jnp.concatenate([f_s, f_t], axis=0).astype(jnp.bfloat16)
    h1 = jnp.maximum(jnp.dot(f, w1.astype(jnp.bfloat16),
                             preferred_element_type=jnp.float32) + b1, 0.0)
    h2 = jnp.maximum(jnp.dot(h1.astype(jnp.bfloat16), w2.astype(jnp.bfloat16),
                             preferred_element_type=jnp.float32) + b2, 0.0)
    logit = jnp.sum(h2 * w3_row, axis=-1, keepdims=True) + b3            # (2B, 1)
    d = jax.nn.sigmoid(logit)
    d_s, d_t = d[:B], d[B:]
    bce_s = jnp.mean(w_s.reshape(B, 1) * -jnp.maximum(jnp.log(d_s), -100.0))
    bce_t = jnp.mean(w_t.reshape(B, 1) * -jnp.maximum(jnp.log(1.0 - d_t), -100.0))
    loss = 0.5 * (bce_s + bce_t)
    acc_s = jnp.sum((d_s >= 0.5).astype(jnp.float32)) * (100.0 / B)
    acc_t = jnp.sum((d_t < 0.5).astype(jnp.float32)) * (100.0 / B)
    return loss, 0.5 * (acc_s + acc_t)


if __name__ == "__main__":
    B, F, H = 8, 128, 128   # lane-aligned small shapes

    key = jax.random.PRNGKey(0)
    k_fs, k_ft, k_params, k_ws, k_wt = jax.random.split(key, 5)
    f_s = jax.random.normal(k_fs, (B, F), jnp.float32)
    f_t = jax.random.normal(k_ft, (B, F), jnp.float32) + 0.5
    params = init_discriminator_params(k_params, F, H)
    w_s = jax.random.uniform(k_ws, (B, 1), jnp.float32, 0.5, 1.5)
    w_t = jax.random.uniform(k_wt, (B, 1), jnp.float32, 0.5, 1.5)

    # --- unweighted path (w_s / w_t = None) ---
    loss, acc = domain_adversarial_loss(f_s, f_t, params)
    loss = jax.block_until_ready(loss)
    acc = jax.block_until_ready(acc)
    loss_ref, acc_ref = _reference(f_s, f_t, params)
    np.testing.assert_allclose(np.asarray(loss), np.asarray(loss_ref), rtol=1e-4, atol=1e-4)
    np.testing.assert_allclose(np.asarray(acc), np.asarray(acc_ref), rtol=1e-4, atol=1e-4)

    # --- weighted BCE path ---
    loss_w, acc_w = domain_adversarial_loss(f_s, f_t, params, w_s, w_t)
    loss_w = jax.block_until_ready(loss_w)
    acc_w = jax.block_until_ready(acc_w)
    loss_w_ref, acc_w_ref = _reference(f_s, f_t, params, w_s, w_t)
    np.testing.assert_allclose(np.asarray(loss_w), np.asarray(loss_w_ref), rtol=1e-4, atol=1e-4)
    np.testing.assert_allclose(np.asarray(acc_w), np.asarray(acc_w_ref), rtol=1e-4, atol=1e-4)

    print("KERNEL_OK")
</pallas_src>

<mosaic_0001>
module attributes {stable_mosaic.version = 11 : i64} {
  func.func @_dann_kernel(%arg0: memref<8x128xbf16, #tpu.memory_space<vmem>>, %arg1: memref<8x128xbf16, #tpu.memory_space<vmem>>, %arg2: memref<8x1xf32, #tpu.memory_space<vmem>>, %arg3: memref<8x1xf32, #tpu.memory_space<vmem>>, %arg4: memref<128x128xbf16, #tpu.memory_space<vmem>>, %arg5: memref<1x128xf32, #tpu.memory_space<vmem>>, %arg6: memref<128x128xbf16, #tpu.memory_space<vmem>>, %arg7: memref<1x128xf32, #tpu.memory_space<vmem>>, %arg8: memref<1x128xf32, #tpu.memory_space<vmem>>, %arg9: memref<1x1xf32, #tpu.memory_space<smem>>, %arg10: memref<1x1xf32, #tpu.memory_space<smem>>, %arg11: memref<1x1xf32, #tpu.memory_space<smem>>) attributes {dimension_semantics = [], scalar_prefetch = 0 : i64, scratch_operands = 0 : i64, tpu.core_type = #tpu.core_type<tc>} {
    %c0 = arith.constant 0 : index
    %c0_0 = arith.constant 0 : index
    %0 = memref.load %arg9[%c0, %c0_0] : memref<1x1xf32, #tpu.memory_space<smem>>
    %c0_1 = arith.constant 0 : index
    %c0_2 = arith.constant 0 : index
    %1 = vector.load %arg0[%c0_1, %c0_2] : memref<8x128xbf16, #tpu.memory_space<vmem>>, vector<8x128xbf16>
    %c0_3 = arith.constant 0 : index
    %c0_4 = arith.constant 0 : index
    %2 = vector.load %arg4[%c0_3, %c0_4] : memref<128x128xbf16, #tpu.memory_space<vmem>>, vector<128x128xbf16>
    %cst = arith.constant dense<0.000000e+00> : vector<8x128xf32>
    %3 = tpu.matmul %1, %2, %cst {dimension_numbers = #tpu.dot_dimension_numbers<[1], [0], [0], [1], [0, 0, 1, 1], [], []>} : vector<8x128xbf16>, vector<128x128xbf16>, vector<8x128xf32> -> vector<8x128xf32>
    %c0_5 = arith.constant 0 : index
    %c0_6 = arith.constant 0 : index
    %4 = vector.load %arg5[%c0_5, %c0_6] : memref<1x128xf32, #tpu.memory_space<vmem>>, vector<1x128xf32>
    %5 = vector.broadcast %4 : vector<1x128xf32> to vector<8x128xf32>
    %6 = arith.addf %3, %5 : vector<8x128xf32>
    %cst_7 = arith.constant 0.000000e+00 : f32
    %7 = vector.broadcast %cst_7 : f32 to vector<8x128xf32>
    %8 = arith.maximumf %6, %7 : vector<8x128xf32>
    %9 = arith.truncf %8 : vector<8x128xf32> to vector<8x128xbf16>
    %c0_8 = arith.constant 0 : index
    %c0_9 = arith.constant 0 : index
    %10 = vector.load %arg6[%c0_8, %c0_9] : memref<128x128xbf16, #tpu.memory_space<vmem>>, vector<128x128xbf16>
    %cst_10 = arith.constant dense<0.000000e+00> : vector<8x128xf32>
    %11 = tpu.matmul %9, %10, %cst_10 {dimension_numbers = #tpu.dot_dimension_numbers<[1], [0], [0], [1], [0, 0, 1, 1], [], []>} : vector<8x128xbf16>, vector<128x128xbf16>, vector<8x128xf32> -> vector<8x128xf32>
    %c0_11 = arith.constant 0 : index
    %c0_12 = arith.constant 0 : index
    %12 = vector.load %arg7[%c0_11, %c0_12] : memref<1x128xf32, #tpu.memory_space<vmem>>, vector<1x128xf32>
    %13 = vector.broadcast %12 : vector<1x128xf32> to vector<8x128xf32>
    %14 = arith.addf %11, %13 : vector<8x128xf32>
    %cst_13 = arith.constant 0.000000e+00 : f32
    %15 = vector.broadcast %cst_13 : f32 to vector<8x128xf32>
    %16 = arith.maximumf %14, %15 : vector<8x128xf32>
    %c0_14 = arith.constant 0 : index
    %c0_15 = arith.constant 0 : index
    %17 = vector.load %arg8[%c0_14, %c0_15] : memref<1x128xf32, #tpu.memory_space<vmem>>, vector<1x128xf32>
    %18 = vector.broadcast %17 : vector<1x128xf32> to vector<8x128xf32>
    %19 = arith.mulf %16, %18 : vector<8x128xf32>
    %cst_16 = arith.constant dense<0.000000e+00> : vector<8xf32>
    %20 = vector.multi_reduction <add>, %19, %cst_16 [1] : vector<8x128xf32> to vector<8xf32>
    %21 = vector.shape_cast %20 : vector<8xf32> to vector<8x1xf32>
    %22 = vector.broadcast %0 : f32 to vector<8x1xf32>
    %23 = arith.addf %21, %22 : vector<8x1xf32>
    %c0_17 = arith.constant 0 : index
    %c0_18 = arith.constant 0 : index
    %24 = vector.load %arg1[%c0_17, %c0_18] : memref<8x128xbf16, #tpu.memory_space<vmem>>, vector<8x128xbf16>
    %c0_19 = arith.constant 0 : index
    %c0_20 = arith.constant 0 : index
    %25 = vector.load %arg4[%c0_19, %c0_20] : memref<128x128xbf16, #tpu.memory_space<vmem>>, vector<128x128xbf16>
    %cst_21 = arith.constant dense<0.000000e+00> : vector<8x128xf32>
    %26 = tpu.matmul %24, %25, %cst_21 {dimension_numbers = #tpu.dot_dimension_numbers<[1], [0], [0], [1], [0, 0, 1, 1], [], []>} : vector<8x128xbf16>, vector<128x128xbf16>, vector<8x128xf32> -> vector<8x128xf32>
    %c0_22 = arith.constant 0 : index
    %c0_23 = arith.constant 0 : index
    %27 = vector.load %arg5[%c0_22, %c0_23] : memref<1x128xf32, #tpu.memory_space<vmem>>, vector<1x128xf32>
    %28 = vector.broadcast %27 : vector<1x128xf32> to vector<8x128xf32>
    %29 = arith.addf %26, %28 : vector<8x128xf32>
    %cst_24 = arith.constant 0.000000e+00 : f32
    %30 = vector.broadcast %cst_24 : f32 to vector<8x128xf32>
    %31 = arith.maximumf %29, %30 : vector<8x128xf32>
    %32 = arith.truncf %31 : vector<8x128xf32> to vector<8x128xbf16>
    %c0_25 = arith.constant 0 : index
    %c0_26 = arith.constant 0 : index
    %33 = vector.load %arg6[%c0_25, %c0_26] : memref<128x128xbf16, #tpu.memory_space<vmem>>, vector<128x128xbf16>
    %cst_27 = arith.constant dense<0.000000e+00> : vector<8x128xf32>
    %34 = tpu.matmul %32, %33, %cst_27 {dimension_numbers = #tpu.dot_dimension_numbers<[1], [0], [0], [1], [0, 0, 1, 1], [], []>} : vector<8x128xbf16>, vector<128x128xbf16>, vector<8x128xf32> -> vector<8x128xf32>
    %c0_28 = arith.constant 0 : index
    %c0_29 = arith.constant 0 : index
    %35 = vector.load %arg7[%c0_28, %c0_29] : memref<1x128xf32, #tpu.memory_space<vmem>>, vector<1x128xf32>
    %36 = vector.broadcast %35 : vector<1x128xf32> to vector<8x128xf32>
    %37 = arith.addf %34, %36 : vector<8x128xf32>
    %cst_30 = arith.constant 0.000000e+00 : f32
    %38 = vector.broadcast %cst_30 : f32 to vector<8x128xf32>
    %39 = arith.maximumf %37, %38 : vector<8x128xf32>
    %c0_31 = arith.constant 0 : index
    %c0_32 = arith.constant 0 : index
    %40 = vector.load %arg8[%c0_31, %c0_32] : memref<1x128xf32, #tpu.memory_space<vmem>>, vector<1x128xf32>
    %41 = vector.broadcast %40 : vector<1x128xf32> to vector<8x128xf32>
    %42 = arith.mulf %39, %41 : vector<8x128xf32>
    %cst_33 = arith.constant dense<0.000000e+00> : vector<8xf32>
    %43 = vector.multi_reduction <add>, %42, %cst_33 [1] : vector<8x128xf32> to vector<8xf32>
    %44 = vector.shape_cast %43 : vector<8xf32> to vector<8x1xf32>
    %45 = vector.broadcast %0 : f32 to vector<8x1xf32>
    %46 = arith.addf %44, %45 : vector<8x1xf32>
    %c0_34 = arith.constant 0 : index
    %c0_35 = arith.constant 0 : index
    %47 = vector.load %arg2[%c0_34, %c0_35] : memref<8x1xf32, #tpu.memory_space<vmem>>, vector<8x1xf32>
    %cst_36 = arith.constant 0.000000e+00 : f32
    %48 = vector.broadcast %cst_36 : f32 to vector<8x1xf32>
    %49 = arith.subf %48, %23 : vector<8x1xf32>
    %cst_37 = arith.constant 0.000000e+00 : f32
    %50 = vector.broadcast %cst_37 : f32 to vector<8x1xf32>
    %51 = arith.maximumf %49, %50 : vector<8x1xf32>
    %52 = math.absf %49 : vector<8x1xf32>
    %cst_38 = arith.constant 0.000000e+00 : f32
    %53 = vector.broadcast %cst_38 : f32 to vector<8x1xf32>
    %54 = arith.subf %53, %52 : vector<8x1xf32>
    %55 = math.exp %54 : vector<8x1xf32>
    %cst_39 = arith.constant 1.000000e+00 : f32
    %56 = vector.broadcast %cst_39 : f32 to vector<8x1xf32>
    %57 = arith.addf %56, %55 : vector<8x1xf32>
    %58 = math.log %57 : vector<8x1xf32>
    %59 = arith.addf %51, %58 : vector<8x1xf32>
    %cst_40 = arith.constant 1.000000e+02 : f32
    %60 = vector.broadcast %cst_40 : f32 to vector<8x1xf32>
    %61 = arith.minimumf %59, %60 : vector<8x1xf32>
    %62 = arith.mulf %47, %61 : vector<8x1xf32>
    %63 = vector.shape_cast %62 : vector<8x1xf32> to vector<1x8x1xf32>
    %cst_41 = arith.constant dense<0.000000e+00> : vector<1xf32>
    %64 = vector.multi_reduction <add>, %63, %cst_41 [1, 2] : vector<1x8x1xf32> to vector<1xf32>
    %65 = vector.shape_cast %64 : vector<1xf32> to vector<1x1x1xf32>
    %66 = vector.extract %65[0, 0, 0] : f32 from vector<1x1x1xf32>
    %cst_42 = arith.constant 1.250000e-01 : f32
    %67 = arith.mulf %66, %cst_42 : f32
    %c0_43 = arith.constant 0 : index
    %c0_44 = arith.constant 0 : index
    %68 = vector.load %arg3[%c0_43, %c0_44] : memref<8x1xf32, #tpu.memory_space<vmem>>, vector<8x1xf32>
    %cst_45 = arith.constant 0.000000e+00 : f32
    %69 = vector.broadcast %cst_45 : f32 to vector<8x1xf32>
    %70 = arith.maximumf %46, %69 : vector<8x1xf32>
    %71 = math.absf %46 : vector<8x1xf32>
    %cst_46 = arith.constant 0.000000e+00 : f32
    %72 = vector.broadcast %cst_46 : f32 to vector<8x1xf32>
    %73 = arith.subf %72, %71 : vector<8x1xf32>
    %74 = math.exp %73 : vector<8x1xf32>
    %cst_47 = arith.constant 1.000000e+00 : f32
    %75 = vector.broadcast %cst_47 : f32 to vector<8x1xf32>
    %76 = arith.addf %75, %74 : vector<8x1xf32>
    %77 = math.log %76 : vector<8x1xf32>
    %78 = arith.addf %70, %77 : vector<8x1xf32>
    %cst_48 = arith.constant 1.000000e+02 : f32
    %79 = vector.broadcast %cst_48 : f32 to vector<8x1xf32>
    %80 = arith.minimumf %78, %79 : vector<8x1xf32>
    %81 = arith.mulf %68, %80 : vector<8x1xf32>
    %82 = vector.shape_cast %81 : vector<8x1xf32> to vector<1x8x1xf32>
    %cst_49 = arith.constant dense<0.000000e+00> : vector<1xf32>
    %83 = vector.multi_reduction <add>, %82, %cst_49 [1, 2] : vector<1x8x1xf32> to vector<1xf32>
    %84 = vector.shape_cast %83 : vector<1xf32> to vector<1x1x1xf32>
    %85 = vector.extract %84[0, 0, 0] : f32 from vector<1x1x1xf32>
    %cst_50 = arith.constant 1.250000e-01 : f32
    %86 = arith.mulf %85, %cst_50 : f32
    %87 = arith.addf %67, %86 : f32
    %cst_51 = arith.constant 5.000000e-01 : f32
    %88 = arith.mulf %cst_51, %87 : f32
    %c0_52 = arith.constant 0 : index
    %c0_53 = arith.constant 0 : index
    %89 = memref.load %arg10[%c0_52, %c0_53] : memref<1x1xf32, #tpu.memory_space<smem>>
    memref.store %88, %arg10[%c0_52, %c0_53] : memref<1x1xf32, #tpu.memory_space<smem>>
    %cst_54 = arith.constant 0.000000e+00 : f32
    %90 = vector.broadcast %cst_54 : f32 to vector<8x1xf32>
    %91 = arith.cmpf oge, %23, %90 : vector<8x1xf32>
    %92 = arith.extui %91 : vector<8x1xi1> to vector<8x1xi32>
    %93 = arith.sitofp %92 : vector<8x1xi32> to vector<8x1xf32>
    %94 = vector.shape_cast %93 : vector<8x1xf32> to vector<1x8x1xf32>
    %cst_55 = arith.constant dense<0.000000e+00> : vector<1xf32>
    %95 = vector.multi_reduction <add>, %94, %cst_55 [1, 2] : vector<1x8x1xf32> to vector<1xf32>
    %96 = vector.shape_cast %95 : vector<1xf32> to vector<1x1x1xf32>
    %97 = vector.extract %96[0, 0, 0] : f32 from vector<1x1x1xf32>
    %cst_56 = arith.constant 1.250000e+01 : f32
    %98 = arith.mulf %97, %cst_56 : f32
    %cst_57 = arith.constant 0.000000e+00 : f32
    %99 = vector.broadcast %cst_57 : f32 to vector<8x1xf32>
    %100 = arith.cmpf olt, %46, %99 : vector<8x1xf32>
    %101 = arith.extui %100 : vector<8x1xi1> to vector<8x1xi32>
    %102 = arith.sitofp %101 : vector<8x1xi32> to vector<8x1xf32>
    %103 = vector.shape_cast %102 : vector<8x1xf32> to vector<1x8x1xf32>
    %cst_58 = arith.constant dense<0.000000e+00> : vector<1xf32>
    %104 = vector.multi_reduction <add>, %103, %cst_58 [1, 2] : vector<1x8x1xf32> to vector<1xf32>
    %105 = vector.shape_cast %104 : vector<1xf32> to vector<1x1x1xf32>
    %106 = vector.extract %105[0, 0, 0] : f32 from vector<1x1x1xf32>
    %cst_59 = arith.constant 1.250000e+01 : f32
    %107 = arith.mulf %106, %cst_59 : f32
    %108 = arith.addf %98, %107 : f32
    %cst_60 = arith.constant 5.000000e-01 : f32
    %109 = arith.mulf %cst_60, %108 : f32
    %c0_61 = arith.constant 0 : index
    %c0_62 = arith.constant 0 : index
    %110 = memref.load %arg11[%c0_61, %c0_62] : memref<1x1xf32, #tpu.memory_space<smem>>
    memref.store %109, %arg11[%c0_61, %c0_62] : memref<1x1xf32, #tpu.memory_space<smem>>
    return
  }
}

</mosaic_0001>

<bundles_post_ra>
// kernel: _dann_forward.1
= control target key start
LH: loop header
LB: loop body
LE: loop exit
PB: predicated region body
PF: predicated region fallthrough
CT: control target
= control target key end

     0   :  { %18 = vsyncpa [#allocation4], 0  ;;  %v674_v1 = vmov 0.0   ;;  %vm675_vm0 = vmmov 0   ;;  %s892_s0 = inlined_call_operand.vmem [shape: bf16[8,128], index: 0, kind: input, shape index: {}]   ;;  %s893_s1 = inlined_call_operand.vmem [shape: bf16[8,128], index: 1, kind: input, shape index: {}]   ;;  %s894_s2 = inlined_call_operand.vmem [shape: f32[8,1], index: 2, kind: input, shape index: {}]   ;;  %s895_s3 = inlined_call_operand.vmem [shape: f32[8,1], index: 3, kind: input, shape index: {}]   ;;  %s896_s4 = inlined_call_operand.vmem [shape: bf16[128,128], index: 4, kind: input, shape index: {}]   ;;  %s897_s5 = inlined_call_operand.vmem [shape: f32[1,128], index: 5, kind: input, shape index: {}]   ;;  %s898_s6 = inlined_call_operand.vmem [shape: bf16[128,128], index: 6, kind: input, shape index: {}]   ;;  %s899_s7 = inlined_call_operand.vmem [shape: f32[1,128], index: 7, kind: input, shape index: {}]   ;;  %s900_s8 = inlined_call_operand.vmem [shape: f32[1,128], index: 8, kind: input, shape index: {}]   ;;  %s901_s9 = inlined_call_operand.<no memory space> [shape: f32[1,1], index: 9, kind: input, shape index: {}]   ;;  %s902_s10 = inlined_call_operand.hbm [shape: f32[1,1], index: 10, kind: output, shape index: {0}]   ;;  %s903_s11 = inlined_call_operand.hbm [shape: f32[1,1], index: 11, kind: output, shape index: {1}]  }
   0x1   :  { %v626_v0 = vld [vmem:[%s896_s4] sm:$0xff]   ;;  %534 = vmatprep.subr.bf16.mxu0 %v674_v1  ;;  %554 = vmatprep.subr.bf16.mxu1 %v674_v1  ;;  %v627_v2 = vld [vmem:[%s896_s4 + $0x8] sm:$0xff]   ;;  %v628_v3 = vld [vmem:[%s896_s4 + $0x10] sm:$0xff]  }
   0x2   :  { %535 = vmatpush3.bf16.msra.mxu0 %v626_v0  ;;  %550 = vmatprep.mubr.msk.bf16.mxu0 %vm675_vm0, %v674_v1  ;;  %v758_v4 = vld [vmem:[%s898_s6] sm:$0xff]   ;;  %v629_v5 = vld [vmem:[%s896_s4 + $0x18] sm:$0xff]   ;;  %v768_v6 = vld [vmem:[%s898_s6 + $0x8] sm:$0xff]  }
   0x3   :  { %536 = vmatprep.subr.bf16.mxu0 %v674_v1  ;;  %570 = vmatprep.mubr.msk.bf16.mxu1 %vm675_vm0, %v674_v1  ;;  %v630_v7 = vld [vmem:[%s896_s4 + $0x20] sm:$0xff]   ;;  %v777_v8 = vld [vmem:[%s898_s6 + $0x10] sm:$0xff]  }
   0x4   :  { %555 = vmatpush3.bf16.msra.mxu1 %v758_v4 }
   0x5   :  { %556 = vmatprep.subr.bf16.mxu1 %v674_v1 }
   0x6   :  { %537 = vmatpush3.bf16.msra.mxu0 %v627_v2 }
   0x7   :  { %538 = vmatprep.subr.bf16.mxu0 %v674_v1 }
   0x8   :  { %557 = vmatpush3.bf16.msra.mxu1 %v768_v6 }
   0x9   :  { %558 = vmatprep.subr.bf16.mxu1 %v674_v1 }
   0xa   :  { %539 = vmatpush3.bf16.msra.mxu0 %v628_v3 }
   0xb   :  { %540 = vmatprep.subr.bf16.mxu0 %v674_v1 }
   0xe   :  { %541 = vmatpush3.bf16.msra.mxu0 %v629_v5 }
   0xf   :  { %542 = vmatprep.subr.bf16.mxu0 %v674_v1 }
  0x10   :  { %19 = vsyncpa [#allocation6], 0  ;;  %v631_v9 = vld [vmem:[%s896_s4 + $0x28] sm:$0xff]   ;;  %559 = vmatpush3.bf16.msra.mxu1 %v777_v8  ;;  %v637_v10 = vld [vmem:[%s898_s6 + $0x18] sm:$0xff]   ;;  %v278_v50 = vstv %s901_s9  ;;  %vm381_vm1 = vcmask 7168   ;;  %s650_s28 = scalar_lea.hbm %s902_s10, 16 }
  0x11   :  { %560 = vmatprep.subr.bf16.mxu1 %v674_v1  ;;  %v632_v11 = vld [vmem:[%s896_s4 + $0x30] sm:$0xff]   ;;  %v638_v12 = vld [vmem:[%s898_s6 + $0x20] sm:$0xff]   ;;  %v633_v13 = vld [vmem:[%s896_s4 + $0x38] sm:$0xff]   ;;  %p651_p0 = scmp.ne.s32.totalorder %s902_s10, %s650_s28  ;;  %p654_p1 = scmp.lt.u32.totalorder %s650_s28, %s902_s10 }
  0x12   :  { %543 = vmatpush3.bf16.msra.mxu0 %v630_v7  ;;  %v639_v14 = vld [vmem:[%s898_s6 + $0x28] sm:$0xff]   ;;  %v42_v15 = vld [vmem:[%s892_s0] sm:$0xf]  ;;  %v640_v17 = vld [vmem:[%s898_s6 + $0x30] sm:$0xff]  }
  0x13   :  { %544 = vmatprep.subr.bf16.mxu0 %v674_v1  ;;  %v280_v16 = vld [vmem:[%s893_s1] sm:$0xf]  ;;  %v641_v18 = vld [vmem:[%s898_s6 + $0x38] sm:$0xff]   ;;  %p656_p2 = pnand %p654_p1, %p651_p0 }
  0x14   :  { %561 = vmatpush3.bf16.msra.mxu1 %v637_v10  ;;  %v477_v19 = vld [vmem:[%s897_s5] ss:$0 sm:$0xff] }
  0x15   :  { %562 = vmatprep.subr.bf16.mxu1 %v674_v1  ;;  %v486_v34 = vld [vmem:[%s899_s7] ss:$0 sm:$0xff] }
  0x16   :  { %545 = vmatpush3.bf16.msra.mxu0 %v631_v9  ;;  %v495_v39 = vld [vmem:[%s900_s8] ss:$0 sm:$0xff] }
  0x17   :  { %546 = vmatprep.subr.bf16.mxu0 %v674_v1 }
  0x18   :  { %563 = vmatpush3.bf16.msra.mxu1 %v638_v12 }
  0x19   :  { %564 = vmatprep.subr.bf16.mxu1 %v674_v1 }
  0x1a   :  { %547 = vmatpush3.bf16.msra.mxu0 %v632_v11 }
  0x1b   :  { %548 = vmatprep.subr.bf16.mxu0 %v674_v1 }
  0x1c   :  { %565 = vmatpush3.bf16.msra.mxu1 %v639_v14 }
  0x1d   :  { %566 = vmatprep.subr.bf16.mxu1 %v674_v1 }
  0x1e   :  { %549 = vmatpush3.bf16.msra.mxu0 %v633_v13 }
  0x1f   :  { %574 = vmatprep.subr.bf16.mxu0 %v674_v1 }
  0x20   :  { %567 = vmatpush3.bf16.msra.mxu1 %v640_v17 }
  0x21   :  { %551 = vmatmul.mubr.bf16.vlgmr.msra.gmra.mrb[0].mxu0 %v42_v15  ;;  %568 = vmatprep.subr.bf16.mxu1 %v674_v1 }
  0x22   :  { %575 = vmatpush3.bf16.msra.mxu0 %v626_v0  ;;  %590 = vmatprep.mubr.msk.bf16.mxu0 %vm675_vm0, %v674_v1 }
  0x23   :  { %576 = vmatprep.subr.bf16.mxu0 %v674_v1 }
  0x24   :  { %569 = vmatpush3.bf16.msra.mxu1 %v641_v18 }
  0x25   :  { %594 = vmatprep.subr.bf16.mxu1 %v674_v1 }
  0x26   :  { %577 = vmatpush3.bf16.msra.mxu0 %v627_v2 }
  0x27   :  { %578 = vmatprep.subr.bf16.mxu0 %v674_v1 }
  0x2a   :  { %579 = vmatpush3.bf16.msra.mxu0 %v628_v3 }
  0x2b   :  { %580 = vmatprep.subr.bf16.mxu0 %v674_v1 }
  0x2e   :  { %581 = vmatpush3.bf16.msra.mxu0 %v629_v5 }
  0x2f   :  { %582 = vmatprep.subr.bf16.mxu0 %v674_v1 }
  0x32   :  { %583 = vmatpush3.bf16.msra.mxu0 %v630_v7 }
  0x33   :  { %584 = vmatprep.subr.bf16.mxu0 %v674_v1 }
  0x36   :  { %585 = vmatpush3.bf16.msra.mxu0 %v631_v9 }
  0x37   :  { %586 = vmatprep.subr.bf16.mxu0 %v674_v1 }
  0x3a   :  { %587 = vmatpush3.bf16.msra.mxu0 %v632_v11 }
  0x3b   :  { %588 = vmatprep.subr.bf16.mxu0 %v674_v1 }
  0x3e   :  { %589 = vmatpush3.bf16.msra.mxu0 %v633_v13 }
  0x41   :  { %591 = vmatmul.mubr.bf16.vlgmr.msra.gmra.mrb[4].mxu0 %v280_v16 }
  0xf4   :  { %v148_v20 = vpop.f32.mrb[0].mxu0 }
  0xf5   :  { %v149_v21 = vadd.f32 %v477_v19, %v148_v20  ;;  %v552_v22 = vpop.f32.mrb[1].mxu0 }
  0xf6   :  { %v151_v23 = vpop.f32.mrb[2].mxu0 }
  0xf7   :  { %v154_v24 = vmax.f32 %v149_v21, 0.0  ;;  %v553_v25 = vpop.f32.mrb[3].mxu0 }
  0xf9   :  { %v155_v26 = vpack.c.bf16 %v154_v24, %v154_v24 }
  0xfb   :  { %571 = vmatmul.mubr.bf16.vlgmr.msra.gmra.mrb[0].mxu1 %v155_v26 }
  0xfc   :  { %595 = vmatpush3.bf16.msra.mxu1 %v758_v4  ;;  %610 = vmatprep.mubr.msk.bf16.mxu1 %vm675_vm0, %v674_v1 }
  0xfd   :  { %596 = vmatprep.subr.bf16.mxu1 %v674_v1 }
 0x100   :  { %597 = vmatpush3.bf16.msra.mxu1 %v768_v6  ;;  %v368_v6 = vld [vmem:[%s894_s2] sm:$0xff] }
 0x101   :  { %598 = vmatprep.subr.bf16.mxu1 %v674_v1 }
 0x104   :  { %599 = vmatpush3.bf16.msra.mxu1 %v777_v8 }
 0x105   :  { %600 = vmatprep.subr.bf16.mxu1 %v674_v1 }
 0x108   :  { %601 = vmatpush3.bf16.msra.mxu1 %v637_v10 }
 0x109   :  { %602 = vmatprep.subr.bf16.mxu1 %v674_v1 }
 0x10c   :  { %603 = vmatpush3.bf16.msra.mxu1 %v638_v12 }
 0x10d   :  { %604 = vmatprep.subr.bf16.mxu1 %v674_v1 }
 0x110   :  { %605 = vmatpush3.bf16.msra.mxu1 %v639_v14 }
 0x111   :  { %606 = vmatprep.subr.bf16.mxu1 %v674_v1 }
 0x114   :  { %v315_v27 = vpop.f32.mrb[4].mxu0  ;;  %607 = vmatpush3.bf16.msra.mxu1 %v640_v17  ;;  %v393_v17 = vld [vmem:[%s895_s3] sm:$0xff] }
 0x115   :  { %v316_v28 = vadd.f32 %v477_v19, %v315_v27  ;;  %v592_v29 = vpop.f32.mrb[5].mxu0  ;;  %608 = vmatprep.subr.bf16.mxu1 %v674_v1 }
 0x116   :  { %v318_v30 = vpop.f32.mrb[6].mxu0 }
 0x117   :  { %v321_v31 = vmax.f32 %v316_v28, 0.0  ;;  %v593_v32 = vpop.f32.mrb[7].mxu0 }
 0x118   :  { %609 = vmatpush3.bf16.msra.mxu1 %v641_v18 }
 0x119   :  { %v322_v33 = vpack.c.bf16 %v321_v31, %v321_v31 }
 0x11b   :  { %611 = vmatmul.mubr.bf16.vlgmr.msra.gmra.mrb[4].mxu1 %v322_v33 }
 0x1ce   :  { %v261_v35 = vpop.f32.mrb[0].mxu1 }
 0x1cf   :  { %v262_v36 = vadd.f32 %v486_v34, %v261_v35  ;;  %v572_v37 = vpop.f32.mrb[1].mxu1 }
 0x1d0   :  { %v264_v38 = vpop.f32.mrb[2].mxu1 }
 0x1d1   :  { %v267_v40 = vmax.f32 %v262_v36, 0.0  ;;  %v573_v41 = vpop.f32.mrb[3].mxu1 }
 0x1d3   :  { %v275_v42 = vmul.f32 %v495_v39, %v267_v40 }
 0x1d5   :  { %276 = vadd.xlane.f32.xlu0 %v275_v42 }
 0x1ee   :  { %v357_v43 = vpop.f32.mrb[4].mxu1 }
 0x1ef   :  { %v358_v44 = vadd.f32 %v486_v34, %v357_v43  ;;  %v612_v45 = vpop.f32.mrb[5].mxu1 }
 0x1f0   :  { %v360_v46 = vpop.f32.mrb[6].mxu1 }
 0x1f1   :  { %v363_v47 = vmax.f32 %v358_v44, 0.0  ;;  %v613_v48 = vpop.f32.mrb[7].mxu1 }
 0x1f3   :  { %v364_v49 = vmul.f32 %v495_v39, %v363_v47 }
 0x1f5   :  { %365 = vadd.xlane.f32.xlu0 %v364_v49 }
 0x262   :  { %v277_v51 = vpop.xlane.xlu0 %276 }
 0x263   :  { %v279_v52 = vadd.f32 %v278_v50, %v277_v51 }
 0x265   :  { %v369_v53 = vsub.f32 0.0, %v279_v52  ;;  %vm420_vm2 = vcmp.ge.f32.partialorder %v279_v52, 0.0 }
 0x266   :  { %v496_v54 = vsel %vm420_vm2, 1.0, %v674_v1 }
 0x267   :  { %v371_v55 = vand.u32 2147483647, %v369_v53  ;;  %v423_v56 = vsel %vm381_vm1, %v496_v54, 0.0  ;;  %v370_v0 = vmax.f32 %v369_v53, 0.0 }
 0x268   :  { %424 = vadd.xlane.f32.xlu0 %v423_v56 }
 0x269   :  { %v372_v57 = vsub.f32 0.0, %v371_v55 }
 0x26b   :  { %v373_v58 = vmul.f32 1.442695, %v372_v57 }
 0x26d   :  { %642 = vpow2.f32 %v373_v58 }
 0x277   :  { %v643_v59 = vpop.eup %642 }
 0x278   :  { %v375_v60 = vadd.f32 1.0, %v643_v59 }
 0x27a   :  { %644 = vlog2.f32 %v375_v60 }
 0x282   :  { %v366_v61 = vpop.xlane.xlu0 %365 }
 0x283   :  { %v367_v62 = vadd.f32 %v366_v61, %v278_v50 }
 0x284   :  { %v645_v63 = vpop.eup %644 }
 0x285   :  { %v395_v2 = vand.u32 2147483647, %v367_v62  ;;  %v377_v3 = vmul.f32 0.6931472, %v645_v63  ;;  %v394_v14 = vmax.f32 %v367_v62, 0.0  ;;  %vm434_vm3 = vcmp.lt.f32.partialorder %v367_v62, 0.0 }
 0x286   :  { %v497_v21 = vsel %vm434_vm3, 1.0, %v674_v1 }
 0x287   :  { %v396_v4 = vsub.f32 0.0, %v395_v2  ;;  %v378_v5 = vadd.f32 %v377_v3, %v370_v0  ;;  %v437_v22 = vsel %vm381_vm1, %v497_v21, 0.0 }
 0x289   :  { %v397_v7 = vmul.f32 1.442695, %v396_v4  ;;  %v379_v8 = vmin.f32 %v378_v5, 100.0 }
 0x28b   :  { %646 = vpow2.f32 %v397_v7  ;;  %v380_v9 = vmul.f32 %v379_v8, %v368_v6 }
 0x28d   :  { %v382_v10 = vsel %vm381_vm1, %v380_v9, 0.0 }
 0x28e   :  { %383 = vadd.xlane.f32.xlu1 %v382_v10 }
 0x295   :  { %v647_v11 = vpop.eup %646 }
 0x296   :  { %v399_v12 = vadd.f32 1.0, %v647_v11 }
 0x298   :  { %648 = vlog2.f32 %v399_v12 }
 0x2a2   :  { %v649_v13 = vpop.eup %648 }
 0x2a3   :  { %v401_v15 = vmul.f32 0.6931472, %v649_v13 }
 0x2a5   :  { %v402_v16 = vadd.f32 %v401_v15, %v394_v14 }
 0x2a7   :  { %v403_v18 = vmin.f32 %v402_v16, 100.0 }
 0x2a9   :  { %v404_v19 = vmul.f32 %v403_v18, %v393_v17 }
 0x2ab   :  { %v405_v20 = vsel %vm381_vm1, %v404_v19, 0.0 }
 0x2ac   :  { %406 = vadd.xlane.f32.xlu1 %v405_v20 }
 0x2b0   :  { %438 = vadd.xlane.f32.xlu1 %v437_v22 }
 0x2f5   :  { %v425_v30 = vpop.xlane.xlu0 %424 }
 0x2f6   :  { %v426_v31 = vrot.slane %v425_v30, 4 }
 0x2f8   :  { %v427_v32 = vadd.f32 %v426_v31, %v425_v30 }
 0x2fa   :  { %v428_v33 = vrot.slane %v427_v32, 2 }
 0x2fc   :  { %v429_v37 = vadd.f32 %v428_v33, %v427_v32 }
 0x2fe   :  { %v430_v42 = vrot.slane %v429_v37, 1 }
 0x300   :  { %v431_v47 = vadd.f32 %v430_v42, %v429_v37 }
 0x31b   :  { %v384_v23 = vpop.xlane.xlu1 %383 }
 0x31c   :  { %v385_v24 = vrot.slane %v384_v23, 4 }
 0x31e   :  { %v386_v25 = vadd.f32 %v385_v24, %v384_v23 }
 0x320   :  { %v387_v26 = vrot.slane %v386_v25, 2 }
 0x322   :  { %v388_v27 = vadd.f32 %v387_v26, %v386_v25 }
 0x324   :  { %v389_v28 = vrot.slane %v388_v27, 1 }
 0x326   :  { %v390_v29 = vadd.f32 %v389_v28, %v388_v27 }
 0x328   :  { %614 = vpush %v390_v29 }
 0x339   :  { %v407_v34 = vpop.xlane.xlu1 %406 }
 0x33a   :  { %v408_v35 = vrot.slane %v407_v34, 4 }
 0x33c   :  { %v409_v36 = vadd.f32 %v408_v35, %v407_v34 }
 0x33d   :  { %v439_v1 = vpop.xlane.xlu1 %438 }
 0x33e   :  { %v410_v38 = vrot.slane %v409_v36, 2  ;;  %v440_v39 = vrot.slane %v439_v1, 4 }
 0x340   :  { %v441_v40 = vadd.f32 %v440_v39, %v439_v1  ;;  %v411_v41 = vadd.f32 %v410_v38, %v409_v36 }
 0x342   :  { %v442_v43 = vrot.slane %v441_v40, 2  ;;  %v412_v44 = vrot.slane %v411_v41, 1 }
 0x344   :  { %v443_v45 = vadd.f32 %v442_v43, %v441_v40  ;;  %v413_v46 = vadd.f32 %v412_v44, %v411_v41 }
 0x346   :  { %616 = vpush %v413_v46  ;;  %v444_v48 = vrot.slane %v443_v45, 1 }
 0x347   :  { %618 = vpush %v431_v47 }
 0x348   :  { %v445_v49 = vadd.f32 %v444_v48, %v443_v45 }
 0x34a   :  { %620 = vpush %v445_v49 }
 0x359   :  { %s615_s2 = spop %614 }
 0x35a   :  { %s392_s3 = smul.f32 0.125, %s615_s2 }
 0x377   :  { %s617_s19 = spop %616 }
 0x378   :  { %s415_s20 = smul.f32 0.125, %s617_s19  ;;  %s619_s21 = spop %618 }
 0x379   :  { %s433_s23 = smul.f32 12.5, %s619_s21 }
 0x37a   :  { %s416_s22 = sadd.f32 %s415_s20, %s392_s3 }
 0x37b   :  { %s621_s24 = spop %620 }
 0x37c   :  { %s447_s25 = smul.f32 12.5, %s621_s24 }
 0x37d   :  { %s417_s26 = smul.f32 0.5, %s416_s22 }
 0x37e   :  { %s448_s27 = sadd.f32 %s447_s25, %s433_s23 }
 0x37f   :  { %419 = sst [smem:[#allocation3]] %s417_s26 }
 0x380   :  { %659 = shalt.err (!%p656_p2)
}
 0x381   :  { %s676_s14 = smov [#allocation3]   ;;  %s449_s6 = smul.f32 0.5, %s448_s27 }
 0x382   :  { %459 = dma.smem_to_hbm %s676_s14, 16, %s902_s10, [#allocation4]  }
 0x383   :  { %451 = sst [smem:[#allocation5]] %s449_s6  ;;  %s660_s16 = scalar_lea.hbm %s903_s11, 16 }
 0x384   :  { %p661_p3 = scmp.ne.s32.totalorder %s903_s11, %s660_s16  ;;  %p664_p4 = scmp.lt.u32.totalorder %s660_s16, %s903_s11 }
 0x386   :  { %p666_p5 = pnand %p664_p4, %p661_p3 }
 0x388   :  { %669 = shalt.err (!%p666_p5)
}
 0x389   :  { %s677_s2 = smov [#allocation5]  }
 0x38a   :  { %467 = dma.smem_to_hbm %s677_s2, 16, %s903_s11, [#allocation6]  }
 0x38b   :  { %670 = dma.done.wait [#allocation4], 16  }
 0x38c   :  { %671 = vsyncadd [#allocation4], 4294967280 }
 0x38d   :  { %672 = dma.done.wait [#allocation6], 16  }
 0x38e   :  { %673 = vsyncadd [#allocation6], 4294967280 }
 0x38f   :  { %474 = sfence }
 0x390   :  { %475 = vsyncpa [#allocation4], 1 }
 0x391   :  { %476 = vsyncpa [#allocation6], 1 }

</bundles_post_ra>
